<compile_context>
chip_gen: v7x
topology: tpu7x:2x2x1
jax: 0.10.0
libtpu: 0.0.40
codegen_flags: <defaults>
</compile_context>

<pallas_src>
import functools

import jax
import jax.numpy as jnp
from jax.experimental import pallas as pl
from jax.experimental.pallas import tpu as pltpu


def _eca_kernel(w_ref, x_ref, *refs, k_size, inv_hw, n_ct, has_halo):
    """One (batch-tile, channel-tile) grid step.

    w_ref : (k,) f32 conv taps in SMEM.
    x_ref : (bt, Ct, HW) input tile in VMEM.
    refs  : (prev_halo_ref, next_halo_ref, o_ref) if has_halo else (o_ref,).
            Halo refs are (bt, Hc, HW) neighbouring-channel views of x.
    """
    if has_halo:
        prev_ref, next_ref, o_ref = refs
    else:
        (o_ref,) = refs

    ci = pl.program_id(1)                        # channel-tile index
    pad = (k_size - 1) // 2
    bt, ct = x_ref.shape[0], x_ref.shape[1]

    x = x_ref[...]                               # (bt, Ct, HW) in input dtype

    # Global average pool: f32 lane reduce, scaled by precomputed 1/(H*W).
    pooled = jnp.sum(x.astype(jnp.float32), axis=-1) * inv_hw        # (bt, Ct)

    if pad > 0:
        if has_halo:
            hb = prev_ref.shape[1]
            prev_tail = jnp.sum(
                prev_ref[:, hb - pad:hb, :].astype(jnp.float32), axis=-1) * inv_hw
            next_head = jnp.sum(
                next_ref[:, 0:pad, :].astype(jnp.float32), axis=-1) * inv_hw
            # Zero-pad the channel conv at the global boundaries.
            prev_tail = jnp.where(ci == 0, jnp.zeros_like(prev_tail), prev_tail)
            next_head = jnp.where(ci == n_ct - 1,
                                  jnp.zeros_like(next_head), next_head)
        else:
            prev_tail = jnp.zeros((bt, pad), jnp.float32)
            next_head = jnp.zeros((bt, pad), jnp.float32)
        padded = jnp.concatenate([prev_tail, pooled, next_head], axis=-1)
    else:
        padded = pooled                                              # k == 1

    # k-tap 1-D conv along the channel axis (static unroll, k is tiny).
    acc = jnp.zeros_like(pooled)
    for j in range(k_size):
        acc = acc + w_ref[j] * padded[:, j:j + ct]

    # Sigmoid gate applied in the input/output dtype: bf16 inputs never
    # materialize a full f32 copy of the tile (only the tiny gate is f32).
    scale = jax.nn.sigmoid(acc).astype(o_ref.dtype)                  # (bt, Ct)
    o_ref[...] = x * scale[:, :, None]


def _tpu_vmem_and_cores():
    """Best-effort hardware query: (VMEM bytes per core, TensorCores per chip)."""
    vmem_cap = 128 << 20
    try:
        vmem_cap = int(pltpu.get_tpu_info().vmem_capacity_bytes)
    except Exception:
        pass
    num_cores = 1
    try:
        kind = jax.devices()[0].device_kind.lower()
        if "v7" in kind:
            num_cores = 2                      # v7x: 2 TensorCores share the grid
    except Exception:
        pass
    return vmem_cap, num_cores


def _largest_channel_tile(c, limit):
    """Largest multiple of 8 dividing c with tile <= limit rows (or None)."""
    best = None
    d = 8
    top = min(c, limit)
    while d <= top:
        if c % d == 0:
            best = d
        d += 8
    return best


def _halo_block(ct, itemsize):
    """Halo block height: dtype-native packed tile (8/16/32 rows) dividing ct."""
    native = max(8, 32 // itemsize)
    best = 8
    d = 16
    while d <= min(ct, native):
        if ct % d == 0:
            best = d
        d += 8
    return best


def _choose_tiles(b, c, hw, itemsize, budget_bytes, num_cores):
    """Pick (batch_tile, channel_tile)."""
    slab = c * hw * itemsize                     # one full-channel sample
    if slab <= budget_bytes or c % 8 != 0:
        ct = c                                   # whole channel axis: no halo
        bt = int(max(1, min(b, budget_bytes // max(slab, 1))))
        while b % bt != 0:
            bt -= 1
        # Multi-TensorCore (v7x): ensure >= num_cores grid steps by splitting
        # the halo-free batch axis first.
        while num_cores > 1 and (b // bt) < num_cores and bt > 1:
            bt -= 1
            while bt > 1 and b % bt != 0:
                bt -= 1
        # Only if batch alone cannot feed every core (e.g. B == 1), split
        # channels (pays halo traffic, so last resort and v7x only).
        if (num_cores > 1 and (b // bt) < num_cores
                and c % (8 * num_cores) == 0
                and (c // num_cores) * hw * itemsize <= budget_bytes):
            ct = c // num_cores
    else:
        bt = 1
        ct = _largest_channel_tile(c, budget_bytes // max(hw * itemsize, 1)) or 8
    return bt, ct


def eca_forward(x, conv_weight, *, channel_tile=None, batch_tile=None,
                block_budget_bytes=None, donate_input=False):
    """x: (B, C, H, W); conv_weight: (1, 1, k) as in nn.Conv1d(1, 1, k, bias=False)."""
    b, c, h, w = x.shape
    hw = h * w
    k_size = conv_weight.shape[-1]
    pad = (k_size - 1) // 2
    itemsize = jnp.dtype(x.dtype).itemsize

    vmem_cap, num_cores = _tpu_vmem_and_cores()
    if block_budget_bytes is None:
        # ~16 MiB blocks on 128 MiB VMEM parts (v5e/v6e), ~8 MiB on v7x (64 MiB).
        block_budget_bytes = max(vmem_cap // 8, 2 << 20)

    if channel_tile is None and batch_tile is None:
        bt, ct = _choose_tiles(b, c, hw, itemsize, block_budget_bytes, num_cores)
    else:
        ct = channel_tile if channel_tile is not None else c
        bt = batch_tile if batch_tile is not None else 1
    if b % bt != 0:
        raise ValueError(f"batch tile {bt} must divide B={b}")
    if c % ct != 0 or not (ct == c or ct % 8 == 0):
        raise ValueError(f"channel tile {ct} incompatible with C={c}")

    n_b = b // bt
    n_ct = c // ct
    has_halo = (n_ct > 1) and pad > 0
    halo_bc = _halo_block(ct, itemsize) if has_halo else 0
    if has_halo and pad > halo_bc:
        raise ValueError("conv kernel too wide for the halo blocks")

    w_flat = conv_weight.reshape(k_size).astype(jnp.float32)
    # Flattened spatial axis stays the (lane-dense) last dimension.
    x3 = x.reshape(b, c, hw)

    kernel = functools.partial(
        _eca_kernel, k_size=k_size, inv_hw=1.0 / hw, n_ct=n_ct, has_halo=has_halo)

    x_spec = pl.BlockSpec((bt, ct, hw), lambda bi, ci: (bi, ci, 0))
    in_specs = [pl.BlockSpec(memory_space=pltpu.MemorySpace.SMEM), x_spec]
    args = [w_flat, x3]
    halo_bytes = 0
    if has_halo:
        cpb = ct // halo_bc                      # halo blocks per channel tile
        max_halo_idx = c // halo_bc - 1
        prev_spec = pl.BlockSpec(
            (bt, halo_bc, hw),
            lambda bi, ci: (bi, jnp.maximum(ci * cpb - 1, 0), 0))
        next_spec = pl.BlockSpec(
            (bt, halo_bc, hw),
            lambda bi, ci: (bi, jnp.minimum((ci + 1) * cpb, max_halo_idx), 0))
        in_specs += [prev_spec, next_spec]
        args += [x3, x3]
        halo_bytes = 2 * bt * halo_bc * hw * itemsize

    block_bytes = bt * ct * hw * itemsize        # one input (= one output) tile
    need = 2 * (2 * block_bytes + halo_bytes) + (8 << 20)
    # Never request the whole physical VMEM (v7x only has 64 MiB per core).
    vmem_limit = int(min(max(need, 16 << 20), vmem_cap * 3 // 4))

    io_alias = {}
    if donate_input and not has_halo:
        # Optional in-place update (halves HBM footprint); only safe when no
        # later grid step re-reads channels this step overwrote (no halo).
        io_alias = {1: 0}

    out = pl.pallas_call(
        kernel,
        out_shape=jax.ShapeDtypeStruct((b, c, hw), x.dtype),
        grid=(n_b, n_ct),
        in_specs=in_specs,
        out_specs=pl.BlockSpec((bt, ct, hw), lambda bi, ci: (bi, ci, 0)),
        input_output_aliases=io_alias,
        compiler_params=pltpu.CompilerParams(
            dimension_semantics=("parallel", "parallel"),
            vmem_limit_bytes=vmem_limit),
    )(*args)
    return out.reshape(b, c, h, w)


def eca_reference(x, conv_weight):
    """Pure-JAX reference mirroring the PyTorch forward."""
    b, c, h, w = x.shape
    k_size = conv_weight.shape[-1]
    pad = (k_size - 1) // 2
    w_flat = conv_weight.reshape(k_size).astype(jnp.float32)
    pooled = x.astype(jnp.float32).mean(axis=(2, 3))          # (B, C)
    padded = jnp.pad(pooled, ((0, 0), (pad, pad)))
    conv = sum(w_flat[j] * padded[:, j:j + c] for j in range(k_size))
    y = jax.nn.sigmoid(conv)[:, :, None, None]                # (B, C, 1, 1)
    return (x.astype(jnp.float32) * y).astype(x.dtype)


if __name__ == "__main__":
    key = jax.random.PRNGKey(0)
    kx1, kw, kx2, kx4 = jax.random.split(key, 4)

    K = 3
    bound = 1.0 / jnp.sqrt(jnp.asarray(K, jnp.float32))
    conv_weight = jax.random.uniform(kw, (1, 1, K), jnp.float32, -bound, bound)

    # Case 1: module-sized tiny input — auto tiling, batch folded into one
    # block (or split across v7x cores), no halo path.
    x1 = jax.random.normal(kx1, (2, 4, 16, 16), dtype=jnp.float32)
    out1 = jax.block_until_ready(eca_forward(x1, conv_weight))
    ref1 = eca_reference(x1, conv_weight)
    assert out1.shape == x1.shape and out1.dtype == x1.dtype
    assert jnp.allclose(out1, ref1, atol=1e-5, rtol=1e-5), "case1 mismatch"

    # Case 2: forced channel tiling — exercises halo blocks + boundary masks.
    x2 = jax.random.normal(kx2, (2, 32, 16, 16), dtype=jnp.float32)
    out2 = jax.block_until_ready(eca_forward(x2, conv_weight, channel_tile=8))
    ref2 = eca_reference(x2, conv_weight)
    assert jnp.allclose(out2, ref2, atol=1e-5, rtol=1e-5), "case2 mismatch"

    # Case 3: bf16 input with forced tiling — dtype-sized (16-row) halo blocks.
    x3 = x2.astype(jnp.bfloat16)
    out3 = jax.block_until_ready(eca_forward(x3, conv_weight, channel_tile=16))
    ref3 = eca_reference(x3, conv_weight)
    assert out3.dtype == jnp.bfloat16
    assert jnp.allclose(out3.astype(jnp.float32), ref3.astype(jnp.float32),
                        atol=3e-2, rtol=3e-2), "case3 mismatch"

    # Case 4: forced batch folding (bt=2 over B=4) — multi-sample blocks.
    x4 = jax.random.normal(kx4, (4, 8, 8, 16), dtype=jnp.float32)
    out4 = jax.block_until_ready(eca_forward(x4, conv_weight, batch_tile=2))
    ref4 = eca_reference(x4, conv_weight)
    assert jnp.allclose(out4, ref4, atol=1e-5, rtol=1e-5), "case4 mismatch"

    print("KERNEL_OK")
</pallas_src>

<mosaic_0001>
module attributes {stable_mosaic.version = 11 : i64} {
  func.func @_eca_kernel(%arg0: i32, %arg1: i32, %arg2: memref<3xf32, #tpu.memory_space<smem>>, %arg3: memref<2x4x256xf32, #tpu.memory_space<vmem>>, %arg4: memref<2x4x256xf32, #tpu.memory_space<vmem>>) attributes {dimension_semantics = [#tpu.dimension_semantics<parallel>, #tpu.dimension_semantics<parallel>], iteration_bounds = array<i64: 1, 1>, scalar_prefetch = 0 : i64, scratch_operands = 0 : i64, tpu.core_type = #tpu.core_type<tc>, window_params = [{transform_indices = @transform_0, window_bounds = array<i64: 3>}, {transform_indices = @transform_1, window_bounds = array<i64: 2, 4, 256>}, {transform_indices = @transform_2, window_bounds = array<i64: 2, 4, 256>}]} {
    %c0 = arith.constant 0 : index
    %c0_0 = arith.constant 0 : index
    %c0_1 = arith.constant 0 : index
    %0 = vector.load %arg3[%c0, %c0_0, %c0_1] : memref<2x4x256xf32, #tpu.memory_space<vmem>>, vector<2x4x256xf32>
    %cst = arith.constant dense<0.000000e+00> : vector<2x4xf32>
    %1 = vector.multi_reduction <add>, %0, %cst [2] : vector<2x4x256xf32> to vector<2x4xf32>
    %cst_2 = arith.constant 3.906250e-03 : f32
    %2 = vector.broadcast %cst_2 : f32 to vector<2x4xf32>
    %3 = arith.mulf %1, %2 : vector<2x4xf32>
    %cst_3 = arith.constant 0.000000e+00 : f32
    %4 = vector.broadcast %cst_3 : f32 to vector<2x1xf32>
    %cst_4 = arith.constant 0.000000e+00 : f32
    %5 = vector.broadcast %cst_4 : f32 to vector<2x1xf32>
    %6 = tpu.concatenate %4, %3, %5 in 1 : vector<2x1xf32>, vector<2x4xf32>, vector<2x1xf32> -> vector<2x6xf32>
    %cst_5 = arith.constant 0.000000e+00 : f32
    %7 = vector.broadcast %cst_5 : f32 to vector<2x4xf32>
    %c0_6 = arith.constant 0 : index
    %8 = memref.load %arg2[%c0_6] : memref<3xf32, #tpu.memory_space<smem>>
    %9 = vector.extract_strided_slice %6 {offsets = [0, 0], sizes = [2, 4], strides = [1, 1]} : vector<2x6xf32> to vector<2x4xf32>
    %10 = vector.broadcast %8 : f32 to vector<2x4xf32>
    %11 = arith.mulf %10, %9 : vector<2x4xf32>
    %12 = arith.addf %7, %11 : vector<2x4xf32>
    %c1 = arith.constant 1 : index
    %13 = memref.load %arg2[%c1] : memref<3xf32, #tpu.memory_space<smem>>
    %14 = vector.extract_strided_slice %6 {offsets = [0, 1], sizes = [2, 4], strides = [1, 1]} : vector<2x6xf32> to vector<2x4xf32>
    %15 = vector.broadcast %13 : f32 to vector<2x4xf32>
    %16 = arith.mulf %15, %14 : vector<2x4xf32>
    %17 = arith.addf %12, %16 : vector<2x4xf32>
    %c2 = arith.constant 2 : index
    %18 = memref.load %arg2[%c2] : memref<3xf32, #tpu.memory_space<smem>>
    %19 = vector.extract_strided_slice %6 {offsets = [0, 2], sizes = [2, 4], strides = [1, 1]} : vector<2x6xf32> to vector<2x4xf32>
    %20 = vector.broadcast %18 : f32 to vector<2x4xf32>
    %21 = arith.mulf %20, %19 : vector<2x4xf32>
    %22 = arith.addf %17, %21 : vector<2x4xf32>
    %23 = arith.negf %22 : vector<2x4xf32>
    %24 = math.exp %23 : vector<2x4xf32>
    %cst_7 = arith.constant 1.000000e+00 : f32
    %25 = vector.broadcast %cst_7 : f32 to vector<2x4xf32>
    %26 = arith.addf %25, %24 : vector<2x4xf32>
    %27 = arith.divf %25, %26 : vector<2x4xf32>
    %28 = vector.shape_cast %27 : vector<2x4xf32> to vector<2x4x1xf32>
    %29 = vector.broadcast %28 : vector<2x4x1xf32> to vector<2x4x256xf32>
    %30 = arith.mulf %0, %29 : vector<2x4x256xf32>
    %c0_8 = arith.constant 0 : index
    %c0_9 = arith.constant 0 : index
    %c0_10 = arith.constant 0 : index
    %31 = vector.load %arg4[%c0_8, %c0_9, %c0_10] : memref<2x4x256xf32, #tpu.memory_space<vmem>>, vector<2x4x256xf32>
    tpu.vector_store %arg4[%c0_8, %c0_9, %c0_10], %30 {strides = array<i32>} : memref<2x4x256xf32, #tpu.memory_space<vmem>>, vector<2x4x256xf32>,
    return
  }
  func.func @transform_0(%arg0: i32, %arg1: i32) -> i32 {
    %c0_i32 = arith.constant 0 : i32
    %c0_i32_0 = arith.constant 0 : i32
    return %c0_i32 : i32
  }
  func.func @transform_1(%arg0: i32, %arg1: i32) -> (i32, i32, i32) {
    %c0_i32 = arith.constant 0 : i32
    %c0_i32_0 = arith.constant 0 : i32
    return %arg0, %arg1, %c0_i32 : i32, i32, i32
  }
  func.func @transform_2(%arg0: i32, %arg1: i32) -> (i32, i32, i32) {
    %c0_i32 = arith.constant 0 : i32
    %c0_i32_0 = arith.constant 0 : i32
    return %arg0, %arg1, %c0_i32 : i32, i32, i32
  }
}

</mosaic_0001>

<bundles_post_ra>
// kernel: tpu_custom_call.1
= control target key start
LH: loop header
LB: loop body
LE: loop exit
PB: predicated region body
PF: predicated region fallthrough
CT: control target
= control target key end

     0   :  { %7 = vsyncpa [#allocation5], 0  ;;  %s312_s0 = inlined_call_operand.hbm [shape: f32[3], index: 0, kind: input, shape index: {}]   ;;  %s313_s1 = inlined_call_operand.hbm [shape: f32[2,4,256], index: 1, kind: input, shape index: {}]   ;;  %s314_s2 = inlined_call_operand.hbm [shape: f32[2,4,256], index: 2, kind: output, shape index: {}]  }
   0x1   :  { %8 = vsyncpa [#allocation3], 0 }
   0x2   :  { %9 = vsyncpa [#allocation4], 0  ;;  %s175_s11 = scalar_lea.hbm %s312_s0, 16 }
   0x3   :  { %p176_p0 = scmp.ne.s32.totalorder %s312_s0, %s175_s11  ;;  %p179_p1 = scmp.lt.u32.totalorder %s175_s11, %s312_s0 }
   0x5   :  { %p181_p2 = pnand %p179_p1, %p176_p0 }
   0x7   :  { %184 = shalt.err (!%p181_p2)
}
   0x8   :  { %s235_s16 = smov [#allocation2]   ;;  %s236_s19 = smov [#allocation6]  }
   0x9   :  { %17 = dma.hbm_to_smem %s312_s0, 16, %s235_s16, [#allocation5]  }
   0xa   :  { %s23_s20 = sshll.u32 %s236_s19, 4  ;;  %s185_s23 = scalar_lea.hbm %s313_s1, 256  ;;  %s24_s20 = int_to_ptr.vmem [resolvable:$true] %s23_s20 }
   0xb   :  { %p186_p3 = scmp.ne.s32.totalorder %s313_s1, %s185_s23  ;;  %p189_p4 = scmp.lt.u32.totalorder %s185_s23, %s313_s1 }
   0xd   :  { %p191_p5 = pnand %p189_p4, %p186_p3 }
   0xf   :  { %194 = shalt.err (!%p191_p5)
}
  0x10   :  { %s195_s28 = scalar_lea.vmem %s24_s20, 256  ;;  %p200_p7 = scmp.lt.s32.totalorder %s24_s20, %s24_s20 }
  0x11   :  { %p196_p6 = scmp.ne.s32.totalorder %s24_s20, %s195_s28  ;;  %p201_p8 = scmp.lt.s32.totalorder %s195_s28, %s195_s28 }
  0x13   :  { %p202_p9 = por %p201_p8, %p200_p7 }
  0x15   :  { %p203_p10 = pnand %p202_p9, %p196_p6 }
  0x17   :  { %206 = shalt.err (!%p203_p10)
}
  0x18   :  { %s237_s0 = smov 128   ;;  %s238_s29 = smov 8  }
  0x19   :  { %29 = dma.hbm_to_vmem [thread:$0]  %s313_s1, 256, %s24_s20, [#allocation3], %s237_s0, %s237_s0, %s238_s29  }
  0x1a   :  { %229 = dma.done.wait [#allocation5], 16  }
  0x1b   :  { %230 = vsyncadd [#allocation5], 4294967280 }
  0x1c   :  { %231 = dma.done.wait [#allocation3], 256  }
  0x1d   :  { %232 = vsyncadd [#allocation3], 4294967040 }
  0x1e   :  { %36 = sfence }
  0x1f   :  { %v285_v0 = vld [vmem:[#allocation6] sm:$0xff]  ;;  %vm45_vm0 = vcmask 1043456   ;;  %v287_v1 = vld [vmem:[#allocation6 + $0x8] sm:$0xff]  ;;  %v60_v10 = vlaneseq  ;;  %s158_s1 = sld [smem:[#allocation2 + $0x1]]  ;;  %s159_s4 = sld [smem:[#allocation2 + $0x2]]  ;;  %vm71_vm1 = vcmask 1041409  }
  0x20   :  { %v41_v2 = vcombine.high %v285_v0, %v285_v0  ;;  %v46_v3 = vsel %vm45_vm0, %v285_v0, 0.0  ;;  %v42_v4 = vcombine.high %v287_v1, %v287_v1  ;;  %v51_v6 = vsel %vm45_vm0, %v287_v1, 0.0  ;;  %s239_s5 = smov 127   ;;  %s240_s6 = smov 126  }
  0x21   :  { %v61_v11 = vand.u32 127, %v60_v10  ;;  %v64_v13 = vshrl.u32 %v60_v10, 7  ;;  %vm74_vm2 = vcmask 7168   ;;  %vm76_vm3 = vcmask 39936   ;;  %s78_s7 = sld [smem:[#allocation2]]  ;;  %s242_s8 = smov [#allocation7]  }
  0x22   :  { %v47_v5 = vsel %vm45_vm0, %v41_v2, 0.0  ;;  %v52_v7 = vsel %vm45_vm0, %v42_v4, 0.0  ;;  %v241_v42 = vmov 839922192   ;;  %s145_s9 = sshll.u32 %s242_s8, 4  ;;  %s146_s9 = int_to_ptr.vmem [resolvable:$true] %s145_s9 }
  0x23   :  { %v48_v8 = vadd.f32 %v47_v5, %v46_v3  ;;  %v53_v9 = vadd.f32 %v52_v7, %v51_v6  ;;  %v62_v12 = vadd.s32 4294967295, %v61_v11  ;;  %v113_v37 = vsub.s32 1, %v64_v13  ;;  %s207_s10 = scalar_lea.vmem %s146_s9, 256  ;;  %p212_p12 = scmp.lt.s32.totalorder %s146_s9, %s146_s9 }
  0x24   :  { %v106_v38 = vsub.s32 0, %v64_v13  ;;  %v121_v43 = vunpack.c.l.s4 %v241_v42  ;;  %p208_p11 = scmp.ne.s32.totalorder %s146_s9, %s207_s10  ;;  %p213_p13 = scmp.lt.s32.totalorder %s207_s10, %s207_s10 }
  0x25   :  { %49 = vadd.xlane.f32.xlu0 %v48_v8  ;;  %v65_v15 = vsub.s32 %v62_v12, %v64_v13  ;;  %v83_v22 = vstv %s158_s1  ;;  %v91_v26 = vstv %s159_s4 }
  0x26   :  { %v122_v44 = vunpack.c.0.s8 %v121_v43  ;;  %p214_p0 = por %p213_p13, %p212_p12 }
  0x27   :  { %v79_v28 = vstv %s78_s7 }
  0x28   :  { %v125_v45 = vsub.s32 %v122_v44, %v64_v13  ;;  %p215_p1 = pnand %p214_p0, %p208_p11 }
  0x29   :  { %54 = vadd.xlane.f32.xlu0 %v53_v9 }
  0xb2   :  { %v50_v14 = vpop.xlane.xlu0 %49 }
  0xb3   :  { %v56_v16 = vmul.f32 0.00390625, %v50_v14 }
  0xb5   :  { %v66_v19 = vrot.slane %v56_v16, %v65_v15 }
  0xb6   :  { %v55_v17 = vpop.xlane.xlu0 %54 }
  0xb7   :  { %v57_v18 = vmul.f32 0.00390625, %v55_v17 }
  0xb9   :  { %v70_v20 = vrot.slane %v57_v18, %v65_v15 }
  0xbb   :  { %v72_v21 = vsel %vm71_vm1, %v70_v20, %v66_v19 }
  0xbc   :  { %v75_v23 = vsel %vm74_vm2, 0.0, %v72_v21 }
  0xbd   :  { %v77_v24 = vsel %vm76_vm3, %v75_v23, 0.0 }
  0xbe   :  { %v84_v25 = vmul.f32 %v83_v22, %v77_v24  ;;  %v92_v27 = vmul.f32 %v91_v26, %v77_v24  ;;  %v80_v30 = vmul.f32 %v79_v28, %v77_v24 }
  0xc0   :  { %86 = vrot.lane.b32.xlu1 %v84_v25, %s239_s5 }
  0xc4   :  { %94 = vrot.lane.b32.xlu1 %v92_v27, %s240_s6 }
 0x132   :  { %v87_v29 = vpop.permute.xlu1 %86 }
 0x133   :  { %v89_v31 = vadd.f32 %v87_v29, %v80_v30 }
 0x136   :  { %v95_v32 = vpop.permute.xlu1 %94 }
 0x137   :  { %v97_v33 = vadd.f32 %v95_v32, %v89_v31 }
 0x139   :  { %v160_v34 = vmul.f32 -1.442695, %v97_v33 }
 0x13b   :  { %171 = vpow2.f32 %v160_v34 }
 0x145   :  { %v172_v35 = vpop.eup %171 }
 0x146   :  { %v101_v36 = vadd.f32 1.0, %v172_v35 }
 0x148   :  { %173 = vrcp.f32 %v101_v36 }
 0x152   :  { %v174_v39 = vpop.eup %173 }
 0x153   :  { %v114_v40 = vrot.slane %v174_v39, %v113_v37  ;;  %v107_v41 = vrot.slane %v174_v39, %v106_v38 }
 0x155   :  { %116 = vbcast.lane.b32.xlu1 %v114_v40, 256  ;;  %109 = vbcast.lane.b32.xlu0 %v107_v41, 256 }
 0x1c7   :  { %v117_v46 = vpop.permute.xlu1 %116  ;;  %v110_v47 = vpop.permute.xlu0 %109 }
 0x1c8   :  { %v133_v48 = vrot.slane %v117_v46, %v125_v45  ;;  %v126_v49 = vrot.slane %v110_v47, %v125_v45 }
 0x1ca   :  { %v136_v50 = vmul.f32 %v126_v49, %v285_v0  ;;  %v137_v51 = vmul.f32 %v133_v48, %v287_v1 }
 0x1cc   :  { %138 = vst [vmem:[#allocation7] sm:$0xff] %v136_v50  ;;  %139 = vst [vmem:[#allocation7 + $0x8] sm:$0xff] %v137_v51 }
 0x1cd   :  { %218 = shalt.err (!%p215_p1)
}
 0x1ce   :  { %s219_s13 = scalar_lea.hbm %s314_s2, 256 }
 0x1cf   :  { %p220_p2 = scmp.ne.s32.totalorder %s314_s2, %s219_s13  ;;  %p223_p3 = scmp.lt.u32.totalorder %s219_s13, %s314_s2 }
 0x1d1   :  { %p225_p4 = pnand %p223_p3, %p220_p2 }
 0x1d3   :  { %228 = shalt.err (!%p225_p4)
}
 0x1d4   :  { %151 = dma.vmem_to_hbm [thread:$0]  %s146_s9, 256, %s314_s2, [#allocation4], %s237_s0, %s237_s0, %s238_s29  }
 0x1d5   :  { %233 = dma.done.wait [#allocation4], 256  }
 0x1d6   :  { %234 = vsyncadd [#allocation4], 4294967040 }
 0x1d7   :  { %155 = vsyncpa [#allocation3], 1 }
 0x1d8   :  { %156 = vsyncpa [#allocation4], 1 }
 0x1d9   :  { %157 = vsyncpa [#allocation5], 1 }

</bundles_post_ra>
